<compile_context>
chip_gen: v5e
topology: v5e:2x2
jax: 0.10.0
libtpu: 0.0.40
codegen_flags: <defaults>
</compile_context>

<pallas_src>
import numpy as np
import jax
import jax.numpy as jnp
from jax.experimental import pallas as pl
from jax.experimental.pallas import tpu as pltpu

LANES = 128

CFG = dict(
    batch_size=2,
    history_times=8,      # T
    input_size=4,         # Cin
    con_output_size=8,    # Cout == LSTM input size
    kernel_size=4,        # Conv1d and MaxPool1d kernel size
    num_convs_layers=3,   # NC
    hidden_size=32,       # H  (4H == 128 lanes)
    lstm_layers=1,
    output_size=2,        # O
    dropout_rate=0.0,
    use_bidirectional=False,
)


def _rup16(n):
    return ((n + 15) // 16) * 16


def _slab_layout(Cin, Cout, K, H, S):
    """Row offsets of each weight segment in the bf16 weight slab (16-row aligned)."""
    r_wc = 0
    r_wih = r_wc + _rup16(K * Cin)
    r_whh = r_wih + _rup16(Cout)
    r_m = r_whh + _rup16(H)
    rows = r_m + _rup16(S * H)
    return r_wc, r_wih, r_whh, r_m, rows


# ----------------------------------------------------------------------------
# Pallas kernel factory (static config captured in the closure)
# ----------------------------------------------------------------------------
def make_kernel(B, T, Cin, Cout, K, NC, H, O):
    Lc = T - K + 1                       # Conv1d 'VALID' output length
    Lp = (Lc - K) // K + 1               # MaxPool1d floor mode: trailing conv samples dropped
    S = NC * Lp                          # LSTM sequence length
    OO = O * O
    r_wc, r_wih, r_whh, r_m, _ = _slab_layout(Cin, Cout, K, H, S)

    def kernel(x_ref, w_ref, b_ref, out_ref):
        f32, bf16 = jnp.float32, jnp.bfloat16

        # ---- static-slice views of the packed slabs --------------------------------
        wc = w_ref[r_wc:r_wc + K * Cin, :]        # (K*Cin, 128) bf16, cols >= NC*Cout are 0
        wih = w_ref[r_wih:r_wih + Cout, :]        # (Cout, 128)  == W_ih^T  (4H lanes)
        whh = w_ref[r_whh:r_whh + H, :]           # (H, 128)     == W_hh^T
        m_out = w_ref[r_m:r_m + S * H, :]         # (S*H, 128)   fused linear_1+view+linear_2

        bz = b_ref[...]                            # (8, 128) f32
        cbias = bz[0:1, :]                         # conv bias       (cols >= NC*Cout are 0)
        lbias = bz[1:2, :]                         # b_ih + b_hh
        obias = bz[2:3, :]                         # fused out bias  (cols >= O*O are 0)
        gscale = bz[3:4, :]                        # act = gscale*tanh(gscale*z) + gbeta
        gbeta = bz[4:5, :]

        # ---- Conv1d(+bias+ReLU) for all NC branches: ONE im2col 2-D matmul ----------
        patches_rows = []
        for b in range(B):
            xb = x_ref[b].astype(bf16)             # (T, Cin)
            patches_rows.append(
                jnp.concatenate([xb[k:k + Lc, :] for k in range(K)], axis=1))  # (Lc, K*Cin)
        patches = jnp.concatenate(patches_rows, axis=0)                        # (B*Lc, K*Cin)
        conv = jnp.dot(patches, wc, preferred_element_type=f32)                # (B*Lc, 128)
        conv = jnp.maximum(conv + cbias, 0.0)

        # ---- MaxPool1d(kernel=K, stride=K), floor mode (drops trailing conv sample) -
        pooled = []                                # Lp x (B, 128)
        for p in range(Lp):
            rows = [jnp.max(conv[b * Lc + p * K:b * Lc + p * K + K, :],
                            axis=0, keepdims=True) for b in range(B)]
            pooled.append(jnp.concatenate(rows, axis=0))

        # ---- input-side LSTM gates hoisted off the recurrence: one row-stacked dot --
        pieces = []
        for s in range(S):
            i_br, p = divmod(s, Lp)                # step s == branch i_br, pool position p
            pieces.append(pooled[p][:, i_br * Cout:(i_br + 1) * Cout])   # (B, Cout)
        seq_rows = jnp.concatenate(pieces, axis=0).astype(bf16)          # (S*B, Cout)
        xg = jnp.dot(seq_rows, wih, preferred_element_type=f32) + lbias  # (S*B, 128)

        # ---- single-layer unidirectional LSTM, statically unrolled ------------------
        # sigmoid(z) = 0.5*tanh(z/2)+0.5; one full-width tanh + FMA covers i,f,g,o per step.
        h = jnp.zeros((B, H), f32)
        c = jnp.zeros((B, H), f32)
        hs = []
        for s in range(S):
            gates = xg[s * B:(s + 1) * B, :] + jnp.dot(
                h.astype(bf16), whh, preferred_element_type=f32)          # (B, 128)
            act = gscale * jnp.tanh(gscale * gates) + gbeta               # [i | f | g | o]
            c = act[:, H:2 * H] * c + act[:, 0:H] * act[:, 2 * H:3 * H]
            h = act[:, 3 * H:4 * H] * jnp.tanh(c)
            hs.append(h)

        # ---- fused linear_1 + view(B,O,S) + linear_2: ONE matmul --------------------
        hcat = jnp.concatenate(hs, axis=1).astype(bf16)                   # (B, S*H)
        res = jnp.dot(hcat, m_out, preferred_element_type=f32) + obias    # (B, 128); cols>=O*O == 0

        # ---- single lane-dense (B, 128) store: [linear_out | h_n | c_n | 0-pad] -----
        out_ref[...] = jnp.concatenate(
            [res[:, 0:OO], h, c, jnp.zeros((B, LANES - OO - 2 * H), f32)], axis=1)

    return kernel


# ----------------------------------------------------------------------------
# One-time host-side parameter packing (hoisted out of the per-call path)
# ----------------------------------------------------------------------------
def pack_params(params, T):
    conv_w = np.asarray(params["conv_w"], np.float32)     # (NC, Cout, Cin, K)
    conv_b = np.asarray(params["conv_b"], np.float32)     # (NC, Cout)
    w_ih = np.asarray(params["w_ih"], np.float32)         # (4H, Cout)
    w_hh = np.asarray(params["w_hh"], np.float32)         # (4H, H)
    b_ih = np.asarray(params["b_ih"], np.float32)
    b_hh = np.asarray(params["b_hh"], np.float32)
    w1 = np.asarray(params["w1"], np.float32)              # (O, H)
    b1 = np.asarray(params["b1"], np.float32)              # (O,)
    w2 = np.asarray(params["w2"], np.float32)              # (O, NC)
    b2 = np.asarray(params["b2"], np.float32)              # (O,)

    NC, Cout, Cin, K = conv_w.shape
    H = w_hh.shape[1]
    O = w1.shape[0]
    Lc = T - K + 1
    Lp = (Lc - K) // K + 1
    S = NC * Lp
    H4 = 4 * H
    OO = O * O
    assert S == w2.shape[1], "linear_2 in_features must equal the LSTM sequence length"
    assert H4 <= LANES and NC * Cout <= LANES and OO + 2 * H <= LANES

    r_wc, r_wih, r_whh, r_m, rows = _slab_layout(Cin, Cout, K, H, S)

    # im2col conv weight: wc[k*Cin+ci, i*Cout+co] = conv_w[i, co, ci, k]
    wc = conv_w.transpose(3, 2, 0, 1).reshape(K * Cin, NC * Cout)

    # fused linear_1 + torch .view(B,O,S) + linear_2 (exact: no activation, dropout pinned to 0)
    #   l1 flat index s*O+o  --view-->  o'*S+s'  --linear_2-->  o'*O+o2
    w1_blk = np.kron(np.eye(S, dtype=np.float32), w1.T)      # (S*H, S*O)
    m2 = np.kron(np.eye(O, dtype=np.float32), w2.T)          # (S*O, O*O)
    m_fused = w1_blk @ m2                                    # (S*H, O*O)
    b_fused = np.tile(b1, S)[None, :] @ m2 + np.tile(b2, O)[None, :]   # (1, O*O)

    w_slab = np.zeros((rows, LANES), np.float32)
    w_slab[r_wc:r_wc + K * Cin, :NC * Cout] = wc
    w_slab[r_wih:r_wih + Cout, :H4] = w_ih.T
    w_slab[r_whh:r_whh + H, :H4] = w_hh.T
    w_slab[r_m:r_m + S * H, :OO] = m_fused

    b_slab = np.zeros((8, LANES), np.float32)
    b_slab[0, :NC * Cout] = conv_b.reshape(-1)
    b_slab[1, :H4] = b_ih + b_hh
    b_slab[2, :OO] = b_fused[0]
    # gate affine constants: sigmoid lanes (i,f,o) -> a=0.5,b=0.5 ; tanh lanes (g) -> a=1,b=0
    b_slab[3, :H4] = np.concatenate([np.full(2 * H, 0.5), np.full(H, 1.0), np.full(H, 0.5)])
    b_slab[4, :H4] = np.concatenate([np.full(2 * H, 0.5), np.full(H, 0.0), np.full(H, 0.5)])

    return (jnp.asarray(w_slab, dtype=jnp.bfloat16),
            jnp.asarray(b_slab, dtype=jnp.float32))


# ----------------------------------------------------------------------------
# Forward wrapper: single gridless pallas_call on whole-array VMEM operands
# ----------------------------------------------------------------------------
def make_forward(cfg):
    B, T, Cin = cfg["batch_size"], cfg["history_times"], cfg["input_size"]
    Cout, K, NC = cfg["con_output_size"], cfg["kernel_size"], cfg["num_convs_layers"]
    H, O = cfg["hidden_size"], cfg["output_size"]
    OO = O * O

    kernel = make_kernel(B, T, Cin, Cout, K, NC, H, O)
    vmem = pl.BlockSpec(memory_space=pltpu.MemorySpace.VMEM)
    call = pl.pallas_call(
        kernel,
        out_shape=jax.ShapeDtypeStruct((B, LANES), jnp.float32),
        in_specs=[vmem, vmem, vmem],
        out_specs=vmem,
    )

    def forward(x, w_slab, b_slab):
        packed = call(x, w_slab, b_slab)                 # (B, 128): [out | h_n | c_n | pad]
        out = packed[:, :OO].reshape(B, O, O)            # wrapper-side layout glue
        hn = packed[None, :, OO:OO + H]
        cn = packed[None, :, OO + H:OO + 2 * H]
        return out, (hn, cn)

    return jax.jit(forward)


# ----------------------------------------------------------------------------
# Deterministic parameter init (PyTorch-style uniform fan-in scaling)
# ----------------------------------------------------------------------------
def init_params(key):
    Cin, Cout = CFG["input_size"], CFG["con_output_size"]
    K, NC = CFG["kernel_size"], CFG["num_convs_layers"]
    H, O = CFG["hidden_size"], CFG["output_size"]
    ks = jax.random.split(key, 10)

    def uni(k, shape, fan):
        b = 1.0 / np.sqrt(fan)
        return jax.random.uniform(k, shape, jnp.float32, -b, b)

    return dict(
        conv_w=uni(ks[0], (NC, Cout, Cin, K), Cin * K),
        conv_b=uni(ks[1], (NC, Cout), Cin * K),
        w_ih=uni(ks[2], (4 * H, Cout), H),
        w_hh=uni(ks[3], (4 * H, H), H),
        b_ih=uni(ks[4], (4 * H,), H),
        b_hh=uni(ks[5], (4 * H,), H),
        w1=uni(ks[6], (O, H), H),
        b1=uni(ks[7], (O,), H),
        w2=uni(ks[8], (O, NC), NC),
        b2=uni(ks[9], (O,), NC),
    )


# ----------------------------------------------------------------------------
# Pure-JAX reference mirroring the PyTorch module op-by-op (bf16-rounded matmul
# operands, f32 accumulation -- same precision model as the kernel's MXU dots).
# ----------------------------------------------------------------------------
def reference_forward(x, params):
    HI = jax.lax.Precision.HIGHEST
    q = lambda a: a.astype(jnp.bfloat16).astype(jnp.float32)

    B = x.shape[0]
    NC, K, H = CFG["num_convs_layers"], CFG["kernel_size"], CFG["hidden_size"]

    xp = jnp.transpose(x, (0, 2, 1))                       # (B, Cin, T) == x.permute(0,2,1)
    branches = []
    for i in range(NC):
        w = params["conv_w"][i]                            # (Cout, Cin, K)
        b = params["conv_b"][i]
        y = jax.lax.conv_general_dilated(
            q(xp), q(w), window_strides=(1,), padding="VALID",
            dimension_numbers=("NCH", "OIH", "NCH"), precision=HI)        # (B, Cout, Lc)
        y = jnp.maximum(y + b[None, :, None], 0.0)
        Lc = y.shape[2]
        Lp = (Lc - K) // K + 1
        y = jnp.stack([jnp.max(y[:, :, p * K:p * K + K], axis=2) for p in range(Lp)], axis=2)
        branches.append(y)
    cat = jnp.concatenate(branches, axis=2)                # (B, Cout, S)
    seq = jnp.transpose(cat, (0, 2, 1))                    # (B, S, Cout)

    wih_t, whh_t = q(params["w_ih"].T), q(params["w_hh"].T)
    h = jnp.zeros((B, H), jnp.float32)
    c = jnp.zeros((B, H), jnp.float32)
    hs = []
    for t in range(seq.shape[1]):
        g = (jnp.dot(q(seq[:, t, :]), wih_t, precision=HI) + params["b_ih"]
             + jnp.dot(q(h), whh_t, precision=HI) + params["b_hh"])
        i_g = jax.nn.sigmoid(g[:, :H])
        f_g = jax.nn.sigmoid(g[:, H:2 * H])
        g_g = jnp.tanh(g[:, 2 * H:3 * H])
        o_g = jax.nn.sigmoid(g[:, 3 * H:])
        c = f_g * c + i_g * g_g
        h = o_g * jnp.tanh(c)
        hs.append(h)
    lstm_out = jnp.stack(hs, axis=1)                       # (B, S, H)
    l1 = jnp.dot(q(lstm_out), q(params["w1"].T), precision=HI) + params["b1"]   # (B, S, O)
    l1v = l1.reshape(B, l1.shape[2], l1.shape[1])          # torch .view(B, O, S)
    out = jnp.dot(q(l1v), q(params["w2"].T), precision=HI) + params["b2"]       # (B, O, O)
    return out, (h[None], c[None])


if __name__ == "__main__":
    key = jax.random.PRNGKey(0)
    kp, kx = jax.random.split(key)
    params = init_params(kp)
    x = jax.random.normal(
        kx, (CFG["batch_size"], CFG["history_times"], CFG["input_size"]), jnp.float32)

    # one-time packing + kernel construction, hoisted out of the per-call path
    w_slab, b_slab = pack_params(params, CFG["history_times"])
    fwd = make_forward(CFG)

    out, (hn, cn) = fwd(x, w_slab, b_slab)
    jax.block_until_ready((out, hn, cn))

    ref_out, (ref_hn, ref_cn) = reference_forward(x, params)
    # Kernel and reference share the bf16-operand / f32-accumulate precision model; the fused
    # linear_1+linear_2 matrix is rounded to bf16 once (vs. the reference's two-stage rounding),
    # so the output tolerance is slightly looser than pure accumulation-order noise.
    np.testing.assert_allclose(np.asarray(out), np.asarray(ref_out), rtol=3e-3, atol=3e-3)
    np.testing.assert_allclose(np.asarray(hn), np.asarray(ref_hn), rtol=2e-3, atol=2e-3)
    np.testing.assert_allclose(np.asarray(cn), np.asarray(ref_cn), rtol=2e-3, atol=2e-3)

    print("KERNEL_OK")
</pallas_src>

<mosaic_0001>
module attributes {stable_mosaic.version = 11 : i64} {
  func.func @kernel(%arg0: memref<2x8x4xf32, #tpu.memory_space<vmem>>, %arg1: memref<160x128xbf16, #tpu.memory_space<vmem>>, %arg2: memref<8x128xf32, #tpu.memory_space<vmem>>, %arg3: memref<2x128xf32, #tpu.memory_space<vmem>>) attributes {dimension_semantics = [], scalar_prefetch = 0 : i64, scratch_operands = 0 : i64, tpu.core_type = #tpu.core_type<tc>} {
    %c0 = arith.constant 0 : index
    %c0_0 = arith.constant 0 : index
    %0 = vector.load %arg1[%c0, %c0_0] : memref<160x128xbf16, #tpu.memory_space<vmem>>, vector<16x128xbf16>
    %c16 = arith.constant 16 : index
    %c0_1 = arith.constant 0 : index
    %1 = vector.load %arg1[%c16, %c0_1] : memref<160x128xbf16, #tpu.memory_space<vmem>>, vector<8x128xbf16>
    %c32 = arith.constant 32 : index
    %c0_2 = arith.constant 0 : index
    %2 = vector.load %arg1[%c32, %c0_2] : memref<160x128xbf16, #tpu.memory_space<vmem>>, vector<32x128xbf16>
    %c64 = arith.constant 64 : index
    %c0_3 = arith.constant 0 : index
    %3 = vector.load %arg1[%c64, %c0_3] : memref<160x128xbf16, #tpu.memory_space<vmem>>, vector<96x128xbf16>
    %c0_4 = arith.constant 0 : index
    %c0_5 = arith.constant 0 : index
    %4 = vector.load %arg2[%c0_4, %c0_5] : memref<8x128xf32, #tpu.memory_space<vmem>>, vector<8x128xf32>
    %5 = vector.extract_strided_slice %4 {offsets = [0, 0], sizes = [1, 128], strides = [1, 1]} : vector<8x128xf32> to vector<1x128xf32>
    %6 = vector.extract_strided_slice %4 {offsets = [1, 0], sizes = [1, 128], strides = [1, 1]} : vector<8x128xf32> to vector<1x128xf32>
    %7 = vector.extract_strided_slice %4 {offsets = [2, 0], sizes = [1, 128], strides = [1, 1]} : vector<8x128xf32> to vector<1x128xf32>
    %8 = vector.extract_strided_slice %4 {offsets = [3, 0], sizes = [1, 128], strides = [1, 1]} : vector<8x128xf32> to vector<1x128xf32>
    %9 = vector.extract_strided_slice %4 {offsets = [4, 0], sizes = [1, 128], strides = [1, 1]} : vector<8x128xf32> to vector<1x128xf32>
    %c0_6 = arith.constant 0 : index
    %c0_7 = arith.constant 0 : index
    %c0_8 = arith.constant 0 : index
    %10 = vector.load %arg0[%c0_6, %c0_7, %c0_8] : memref<2x8x4xf32, #tpu.memory_space<vmem>>, vector<1x8x4xf32>
    %11 = vector.shape_cast %10 : vector<1x8x4xf32> to vector<8x4xf32>
    %12 = arith.truncf %11 : vector<8x4xf32> to vector<8x4xbf16>
    %13 = vector.extract_strided_slice %12 {offsets = [0, 0], sizes = [5, 4], strides = [1, 1]} : vector<8x4xbf16> to vector<5x4xbf16>
    %14 = vector.extract_strided_slice %12 {offsets = [1, 0], sizes = [5, 4], strides = [1, 1]} : vector<8x4xbf16> to vector<5x4xbf16>
    %15 = vector.extract_strided_slice %12 {offsets = [2, 0], sizes = [5, 4], strides = [1, 1]} : vector<8x4xbf16> to vector<5x4xbf16>
    %16 = vector.extract_strided_slice %12 {offsets = [3, 0], sizes = [5, 4], strides = [1, 1]} : vector<8x4xbf16> to vector<5x4xbf16>
    %17 = tpu.concatenate %13, %14, %15, %16 in 1 : vector<5x4xbf16>, vector<5x4xbf16>, vector<5x4xbf16>, vector<5x4xbf16> -> vector<5x16xbf16>
    %c1 = arith.constant 1 : index
    %c0_9 = arith.constant 0 : index
    %c0_10 = arith.constant 0 : index
    %18 = vector.load %arg0[%c1, %c0_9, %c0_10] : memref<2x8x4xf32, #tpu.memory_space<vmem>>, vector<1x8x4xf32>
    %19 = vector.shape_cast %18 : vector<1x8x4xf32> to vector<8x4xf32>
    %20 = arith.truncf %19 : vector<8x4xf32> to vector<8x4xbf16>
    %21 = vector.extract_strided_slice %20 {offsets = [0, 0], sizes = [5, 4], strides = [1, 1]} : vector<8x4xbf16> to vector<5x4xbf16>
    %22 = vector.extract_strided_slice %20 {offsets = [1, 0], sizes = [5, 4], strides = [1, 1]} : vector<8x4xbf16> to vector<5x4xbf16>
    %23 = vector.extract_strided_slice %20 {offsets = [2, 0], sizes = [5, 4], strides = [1, 1]} : vector<8x4xbf16> to vector<5x4xbf16>
    %24 = vector.extract_strided_slice %20 {offsets = [3, 0], sizes = [5, 4], strides = [1, 1]} : vector<8x4xbf16> to vector<5x4xbf16>
    %25 = tpu.concatenate %21, %22, %23, %24 in 1 : vector<5x4xbf16>, vector<5x4xbf16>, vector<5x4xbf16>, vector<5x4xbf16> -> vector<5x16xbf16>
    %26 = tpu.concatenate %17, %25 in 0 : vector<5x16xbf16>, vector<5x16xbf16> -> vector<10x16xbf16>
    %cst = arith.constant dense<0.000000e+00> : vector<10x128xf32>
    %27 = tpu.matmul %26, %0, %cst {dimension_numbers = #tpu.dot_dimension_numbers<[1], [0], [0], [1], [0, 0, 1, 1], [], []>} : vector<10x16xbf16>, vector<16x128xbf16>, vector<10x128xf32> -> vector<10x128xf32>
    %28 = vector.broadcast %5 : vector<1x128xf32> to vector<10x128xf32>
    %29 = arith.addf %27, %28 : vector<10x128xf32>
    %cst_11 = arith.constant 0.000000e+00 : f32
    %30 = vector.broadcast %cst_11 : f32 to vector<10x128xf32>
    %31 = arith.maximumf %29, %30 : vector<10x128xf32>
    %32 = vector.extract_strided_slice %31 {offsets = [0, 0], sizes = [4, 128], strides = [1, 1]} : vector<10x128xf32> to vector<4x128xf32>
    %cst_12 = arith.constant dense<0xFF800000> : vector<128xf32>
    %33 = vector.multi_reduction <maximumf>, %32, %cst_12 [0] : vector<4x128xf32> to vector<128xf32>
    %34 = vector.shape_cast %33 : vector<128xf32> to vector<1x128xf32>
    %35 = vector.extract_strided_slice %31 {offsets = [5, 0], sizes = [4, 128], strides = [1, 1]} : vector<10x128xf32> to vector<4x128xf32>
    %cst_13 = arith.constant dense<0xFF800000> : vector<128xf32>
    %36 = vector.multi_reduction <maximumf>, %35, %cst_13 [0] : vector<4x128xf32> to vector<128xf32>
    %37 = vector.shape_cast %36 : vector<128xf32> to vector<1x128xf32>
    %38 = tpu.concatenate %34, %37 in 0 : vector<1x128xf32>, vector<1x128xf32> -> vector<2x128xf32>
    %39 = vector.extract_strided_slice %38 {offsets = [0, 0], sizes = [2, 8], strides = [1, 1]} : vector<2x128xf32> to vector<2x8xf32>
    %40 = vector.extract_strided_slice %38 {offsets = [0, 8], sizes = [2, 8], strides = [1, 1]} : vector<2x128xf32> to vector<2x8xf32>
    %41 = vector.extract_strided_slice %38 {offsets = [0, 16], sizes = [2, 8], strides = [1, 1]} : vector<2x128xf32> to vector<2x8xf32>
    %42 = tpu.concatenate %39, %40, %41 in 0 : vector<2x8xf32>, vector<2x8xf32>, vector<2x8xf32> -> vector<6x8xf32>
    %43 = arith.truncf %42 : vector<6x8xf32> to vector<6x8xbf16>
    %cst_14 = arith.constant dense<0.000000e+00> : vector<6x128xf32>
    %44 = tpu.matmul %43, %1, %cst_14 {dimension_numbers = #tpu.dot_dimension_numbers<[1], [0], [0], [1], [0, 0, 1, 1], [], []>} : vector<6x8xbf16>, vector<8x128xbf16>, vector<6x128xf32> -> vector<6x128xf32>
    %45 = vector.broadcast %6 : vector<1x128xf32> to vector<6x128xf32>
    %46 = arith.addf %44, %45 : vector<6x128xf32>
    %cst_15 = arith.constant 0.000000e+00 : f32
    %47 = vector.broadcast %cst_15 : f32 to vector<2x32xf32>
    %cst_16 = arith.constant 0.000000e+00 : f32
    %48 = vector.broadcast %cst_16 : f32 to vector<2x32xf32>
    %49 = vector.extract_strided_slice %46 {offsets = [0, 0], sizes = [2, 128], strides = [1, 1]} : vector<6x128xf32> to vector<2x128xf32>
    %50 = arith.truncf %47 : vector<2x32xf32> to vector<2x32xbf16>
    %cst_17 = arith.constant dense<0.000000e+00> : vector<2x128xf32>
    %51 = tpu.matmul %50, %2, %cst_17 {dimension_numbers = #tpu.dot_dimension_numbers<[1], [0], [0], [1], [0, 0, 1, 1], [], []>} : vector<2x32xbf16>, vector<32x128xbf16>, vector<2x128xf32> -> vector<2x128xf32>
    %52 = arith.addf %49, %51 : vector<2x128xf32>
    %53 = vector.broadcast %8 : vector<1x128xf32> to vector<2x128xf32>
    %54 = arith.mulf %53, %52 : vector<2x128xf32>
    %55 = math.tanh %54 : vector<2x128xf32>
    %56 = vector.broadcast %8 : vector<1x128xf32> to vector<2x128xf32>
    %57 = arith.mulf %56, %55 : vector<2x128xf32>
    %58 = vector.broadcast %9 : vector<1x128xf32> to vector<2x128xf32>
    %59 = arith.addf %57, %58 : vector<2x128xf32>
    %60 = vector.extract_strided_slice %59 {offsets = [0, 32], sizes = [2, 32], strides = [1, 1]} : vector<2x128xf32> to vector<2x32xf32>
    %61 = arith.mulf %60, %48 : vector<2x32xf32>
    %62 = vector.extract_strided_slice %59 {offsets = [0, 0], sizes = [2, 32], strides = [1, 1]} : vector<2x128xf32> to vector<2x32xf32>
    %63 = vector.extract_strided_slice %59 {offsets = [0, 64], sizes = [2, 32], strides = [1, 1]} : vector<2x128xf32> to vector<2x32xf32>
    %64 = arith.mulf %62, %63 : vector<2x32xf32>
    %65 = arith.addf %61, %64 : vector<2x32xf32>
    %66 = vector.extract_strided_slice %59 {offsets = [0, 96], sizes = [2, 32], strides = [1, 1]} : vector<2x128xf32> to vector<2x32xf32>
    %67 = math.tanh %65 : vector<2x32xf32>
    %68 = arith.mulf %66, %67 : vector<2x32xf32>
    %69 = vector.extract_strided_slice %46 {offsets = [2, 0], sizes = [2, 128], strides = [1, 1]} : vector<6x128xf32> to vector<2x128xf32>
    %70 = arith.truncf %68 : vector<2x32xf32> to vector<2x32xbf16>
    %cst_18 = arith.constant dense<0.000000e+00> : vector<2x128xf32>
    %71 = tpu.matmul %70, %2, %cst_18 {dimension_numbers = #tpu.dot_dimension_numbers<[1], [0], [0], [1], [0, 0, 1, 1], [], []>} : vector<2x32xbf16>, vector<32x128xbf16>, vector<2x128xf32> -> vector<2x128xf32>
    %72 = arith.addf %69, %71 : vector<2x128xf32>
    %73 = vector.broadcast %8 : vector<1x128xf32> to vector<2x128xf32>
    %74 = arith.mulf %73, %72 : vector<2x128xf32>
    %75 = math.tanh %74 : vector<2x128xf32>
    %76 = vector.broadcast %8 : vector<1x128xf32> to vector<2x128xf32>
    %77 = arith.mulf %76, %75 : vector<2x128xf32>
    %78 = vector.broadcast %9 : vector<1x128xf32> to vector<2x128xf32>
    %79 = arith.addf %77, %78 : vector<2x128xf32>
    %80 = vector.extract_strided_slice %79 {offsets = [0, 32], sizes = [2, 32], strides = [1, 1]} : vector<2x128xf32> to vector<2x32xf32>
    %81 = arith.mulf %80, %65 : vector<2x32xf32>
    %82 = vector.extract_strided_slice %79 {offsets = [0, 0], sizes = [2, 32], strides = [1, 1]} : vector<2x128xf32> to vector<2x32xf32>
    %83 = vector.extract_strided_slice %79 {offsets = [0, 64], sizes = [2, 32], strides = [1, 1]} : vector<2x128xf32> to vector<2x32xf32>
    %84 = arith.mulf %82, %83 : vector<2x32xf32>
    %85 = arith.addf %81, %84 : vector<2x32xf32>
    %86 = vector.extract_strided_slice %79 {offsets = [0, 96], sizes = [2, 32], strides = [1, 1]} : vector<2x128xf32> to vector<2x32xf32>
    %87 = math.tanh %85 : vector<2x32xf32>
    %88 = arith.mulf %86, %87 : vector<2x32xf32>
    %89 = vector.extract_strided_slice %46 {offsets = [4, 0], sizes = [2, 128], strides = [1, 1]} : vector<6x128xf32> to vector<2x128xf32>
    %90 = arith.truncf %88 : vector<2x32xf32> to vector<2x32xbf16>
    %cst_19 = arith.constant dense<0.000000e+00> : vector<2x128xf32>
    %91 = tpu.matmul %90, %2, %cst_19 {dimension_numbers = #tpu.dot_dimension_numbers<[1], [0], [0], [1], [0, 0, 1, 1], [], []>} : vector<2x32xbf16>, vector<32x128xbf16>, vector<2x128xf32> -> vector<2x128xf32>
    %92 = arith.addf %89, %91 : vector<2x128xf32>
    %93 = vector.broadcast %8 : vector<1x128xf32> to vector<2x128xf32>
    %94 = arith.mulf %93, %92 : vector<2x128xf32>
    %95 = math.tanh %94 : vector<2x128xf32>
    %96 = vector.broadcast %8 : vector<1x128xf32> to vector<2x128xf32>
    %97 = arith.mulf %96, %95 : vector<2x128xf32>
    %98 = vector.broadcast %9 : vector<1x128xf32> to vector<2x128xf32>
    %99 = arith.addf %97, %98 : vector<2x128xf32>
    %100 = vector.extract_strided_slice %99 {offsets = [0, 32], sizes = [2, 32], strides = [1, 1]} : vector<2x128xf32> to vector<2x32xf32>
    %101 = arith.mulf %100, %85 : vector<2x32xf32>
    %102 = vector.extract_strided_slice %99 {offsets = [0, 0], sizes = [2, 32], strides = [1, 1]} : vector<2x128xf32> to vector<2x32xf32>
    %103 = vector.extract_strided_slice %99 {offsets = [0, 64], sizes = [2, 32], strides = [1, 1]} : vector<2x128xf32> to vector<2x32xf32>
    %104 = arith.mulf %102, %103 : vector<2x32xf32>
    %105 = arith.addf %101, %104 : vector<2x32xf32>
    %106 = vector.extract_strided_slice %99 {offsets = [0, 96], sizes = [2, 32], strides = [1, 1]} : vector<2x128xf32> to vector<2x32xf32>
    %107 = math.tanh %105 : vector<2x32xf32>
    %108 = arith.mulf %106, %107 : vector<2x32xf32>
    %109 = tpu.concatenate %68, %88, %108 in 1 : vector<2x32xf32>, vector<2x32xf32>, vector<2x32xf32> -> vector<2x96xf32>
    %110 = arith.truncf %109 : vector<2x96xf32> to vector<2x96xbf16>
    %cst_20 = arith.constant dense<0.000000e+00> : vector<2x128xf32>
    %111 = tpu.matmul %110, %3, %cst_20 {dimension_numbers = #tpu.dot_dimension_numbers<[1], [0], [0], [1], [0, 0, 1, 1], [], []>} : vector<2x96xbf16>, vector<96x128xbf16>, vector<2x128xf32> -> vector<2x128xf32>
    %112 = vector.broadcast %7 : vector<1x128xf32> to vector<2x128xf32>
    %113 = arith.addf %111, %112 : vector<2x128xf32>
    %114 = vector.extract_strided_slice %113 {offsets = [0, 0], sizes = [2, 4], strides = [1, 1]} : vector<2x128xf32> to vector<2x4xf32>
    %cst_21 = arith.constant 0.000000e+00 : f32
    %115 = vector.broadcast %cst_21 : f32 to vector<2x60xf32>
    %116 = tpu.concatenate %114, %108, %105, %115 in 1 : vector<2x4xf32>, vector<2x32xf32>, vector<2x32xf32>, vector<2x60xf32> -> vector<2x128xf32>
    %c0_22 = arith.constant 0 : index
    %c0_23 = arith.constant 0 : index
    %117 = vector.load %arg3[%c0_22, %c0_23] : memref<2x128xf32, #tpu.memory_space<vmem>>, vector<2x128xf32>
    tpu.vector_store %arg3[%c0_22, %c0_23], %116 {strides = array<i32>} : memref<2x128xf32, #tpu.memory_space<vmem>>, vector<2x128xf32>,
    return
  }
}

</mosaic_0001>

<bundles_post_ra>
// kernel: forward.1
= control target key start
LH: loop header
LB: loop body
LE: loop exit
PB: predicated region body
PF: predicated region fallthrough
CT: control target
= control target key end

     0   :  { %8 = vsyncpa [#allocation3], 0  ;;  %s547_s15 = smov [#allocation2]   ;;  %s548_s17 = smov 64   ;;  %s641_s0 = inlined_call_operand.vmem [shape: f32[2,8,4], index: 0, kind: input, shape index: {}]   ;;  %s642_s1 = inlined_call_operand.hbm [shape: bf16[160,128], index: 1, kind: input, shape index: {}]   ;;  %s643_s2 = inlined_call_operand.vmem [shape: f32[8,128], index: 2, kind: input, shape index: {}]   ;;  %s644_s3 = inlined_call_operand.vmem [shape: f32[2,128], index: 3, kind: output, shape index: {}]  }
   0x1   :  { %s15_s14 = sshll.u32 %s642_s1, 4  ;;  %s17_s16 = sshll.u32 %s547_s15, 4  ;;  %s16_s14 = int_to_ptr.hbm [resolvable:$true] %s15_s14  ;;  %s18_s16 = int_to_ptr.vmem [resolvable:$true] %s17_s16 }
   0x2   :  { %s549_s18 = smov 4  }
   0x3   :  { %23 = dma.hbm_to_vmem [thread:$0]  %s16_s14, 1280, %s18_s16, [#allocation3], %s548_s17, %s548_s17, %s549_s18  }
   0x4   :  { %545 = dma.done.wait [#allocation3], 1280  }
   0x5   :  { %546 = vsyncadd [#allocation3], 4294966016  ;;  %v447_v0 = vld [vmem:[%s641_s0 + $0x8] sm:$0xff]  ;;  %v51_v1 = vld [vmem:[%s641_s0] sm:$0xff]  ;;  %s550_s1 = smov 8   ;;  %s551_s0 = smov 12  }
   0x6   :  { %v86_v2 = vpack.c.bf16 %v447_v0, %v447_v0  ;;  %v52_v3 = vpack.c.bf16 %v51_v1, %v51_v1  ;;  %v489_v24 = vld [vmem:[#allocation2] sm:$0xff]  ;;  %vm73_vm0 = vcmask 31744   ;;  %vm77_vm1 = vcmask 64512   ;;  %s553_s25 = smov 120   ;;  %s555_s26 = smov 32  }
   0x7   :  { %144 = vmatpush.bf16.msra.mxu0 %v489_v24  ;;  %vm80_vm2 = vcmask 97280   ;;  %vm122_vm3 = vcmask 1042432   ;;  %vm123_vm4 = vsmask.f32 2304  ;;  %vm133_vm6 = vcmask 130048   ;;  %v601_v43 = vld [vmem:[%s643_s2] sm:$0xff] }
   0x8   :  { %v88_v4 = vunpack.c.l.b16 %v86_v2  ;;  %v54_v5 = vunpack.c.l.b16 %v52_v3  ;;  %vm124_vm5 = vmand %vm122_vm3, %vm123_vm4  ;;  %v126_v44 = vperm.slane %v601_v43, 0  ;;  %vm153_vm7 = vcmask 1043456   ;;  %s552_s2 = smov 112   ;;  %s556_s27 = smov 36  }
   0x9   :  { %vm161_vm8 = vcmask 1047557   ;;  %vm163_vm9 = vcmask 1040384   ;;  %vm182_vm10 = vcmask 1041408   ;;  %vm218_vm11 = vcmask 261120   ;;  %s557_s28 = smov 96  }
   0xa   :  { %v89_v6 = vpack.c.b16 %v88_v4, %v88_v4  ;;  %v55_v7 = vpack.c.b16 %v54_v5, %v54_v5  ;;  %vm371_vm12 = vcmask 523264   ;;  %vm411_vm13 = vcmask 785408  }
   0xb   :  { %vm437_vm14 = vcmask 293888   ;;  %vm439_vm15 = vcmask 556032  }
   0xc   :  { %v91_v8 = vshrl.u32 %v89_v6, 16  ;;  %v93_v9 = vshll.u32 %v89_v6, 16  ;;  %v57_v10 = vshrl.u32 %v55_v7, 16  ;;  %v59_v11 = vshll.u32 %v55_v7, 16 }
   0xd   :  { %v65_v12 = vrot.slane %v55_v7, 1  ;;  %v99_v22 = vrot.slane %v89_v6, 1  ;;  %v33_v6 = vld [vmem:[#allocation2 + $0x8] sm:$0xf] }
   0xe   :  { %v102_v13 = vrot.slane %v91_v8, 1  ;;  %v103_v14 = vrot.slane %v93_v9, 2  ;;  %v95_v15 = vrot.slane %v93_v9, 1  ;;  %v68_v16 = vrot.slane %v57_v10, 1  ;;  %v490_v9 = vld [vmem:[#allocation2 + $0x10] sm:$0xff] }
   0xf   :  { %66 = vrot.lane.b32.xlu2 %v65_v12, %s550_s1  ;;  %v69_v17 = vrot.slane %v59_v11, 2  ;;  %v61_v20 = vrot.slane %v59_v11, 1  ;;  %v191_v7 = vsel %vm153_vm7, %v33_v6, 0 }
  0x10   :  { %v104_v18 = vor.u32 %v103_v14, %v102_v13  ;;  %v96_v19 = vor.u32 %v95_v15, %v91_v8  ;;  %200 = vmatpush.bf16.msra.mxu2 %v191_v7  ;;  %v491_v8 = vld [vmem:[#allocation2 + $0x18] sm:$0xff]  ;;  %v554_v15 = vmov 0  }
  0x11   :  { %v70_v21 = vor.u32 %v69_v17, %v68_v16  ;;  %v62_v23 = vor.u32 %v61_v20, %v57_v10  ;;  %272 = vmatpush.bf16.msra.mxu3 %v491_v8  ;;  %321 = vmatpush.bf16.msrb.mxu0 %v491_v8 }
  0x12   :  { %105 = vrot.lane.b32.xlu1 %v104_v18, %s551_s0  ;;  %97 = vrot.lane.b32.xlu0 %v96_v19, %s549_s18  ;;  %v186_v18 = vperm.slane %v601_v43, 1  ;;  %v610_v19 = vperm.slane %v601_v43, 3 }
  0x14   :  { %228 = vmatpush.bf16.msrb.mxu2 %v491_v8 }
  0x15   :  { %273 = vmatpush.bf16.msra.mxu3 %v490_v9  ;;  %322 = vmatpush.bf16.msrb.mxu0 %v490_v9 }
  0x17   :  { %71 = vrot.lane.b32.xlu2 %v70_v21, %s551_s0 }
  0x18   :  { %229 = vmatpush.bf16.msrb.mxu2 %v490_v9 }
  0x1a   :  { %100 = vrot.lane.b32.xlu0 %v99_v22, %s550_s1  ;;  %63 = vrot.lane.b32.xlu1 %v62_v23, %s549_s18 }
  0x69   :  { %v67_v27 = vpop.permute.xlu2 %66 }
  0x71   :  { %v72_v38 = vpop.permute.xlu2 %71 }
  0x84   :  { %v106_v25 = vpop.permute.xlu1 %105  ;;  %v98_v26 = vpop.permute.xlu0 %97 }
  0x85   :  { %v109_v28 = vsel %vm73_vm0, %v86_v2, %v98_v26 }
  0x8c   :  { %v101_v29 = vpop.permute.xlu0 %100  ;;  %v64_v30 = vpop.permute.xlu1 %63 }
  0x8d   :  { %v111_v31 = vsel %vm77_vm1, %v109_v28, %v101_v29  ;;  %v76_v33 = vsel %vm73_vm0, %v52_v3, %v64_v30 }
  0x8e   :  { %v113_v32 = vsel %vm80_vm2, %v111_v31, %v106_v25  ;;  %v79_v39 = vsel %vm77_vm1, %v76_v33, %v67_v27  ;;  %v240_v25 = vperm.slane %v601_v43, 4 }
  0x8f   :  { %v114_v34 = vshrl.u32 %v113_v32, 16  ;;  %v117_v35 = vshll.u32 %v113_v32, 16  ;;  %v82_v41 = vsel %vm80_vm2, %v79_v39, %v72_v38 }
  0x91   :  { %v116_v36 = vrot.slane %v114_v34, 5  ;;  %v119_v37 = vrot.slane %v117_v35, 6 }
  0x93   :  { %v120_v40 = vor.u32 %v119_v37, %v116_v36 }
  0x95   :  { %v125_v42 = vsel %vm124_vm5, %v82_v41, %v120_v40 }
  0x96   :  { %452 = vmatmul.msk.bf16.vlgmr.msra.gmra.mxu0 %vm133_vm6, %v125_v42 }
 0x113   :  { %v146_v45 = vpop.f32.mrf.mxu0 }
 0x114   :  { %v147_v46 = vadd.f32 %v146_v45, %v126_v44 }
 0x116   :  { %v151_v47 = vmax.f32 %v147_v46, 0.0 }
 0x118   :  { %v154_v48 = vsel %vm153_vm7, %v151_v47, -inf  ;;  %v162_v54 = vsel %vm161_vm8, %v151_v47, -inf }
 0x119   :  { %v155_v49 = vrot.slane %v154_v48, 4 }
 0x11b   :  { %v148_v50 = vpop.f32.mrf.mxu0  ;;  %v156_v52 = vmax.f32 %v154_v48, %v155_v49 }
 0x11c   :  { %v149_v51 = vadd.f32 %v148_v50, %v126_v44 }
 0x11d   :  { %v157_v56 = vrot.slane %v156_v52, 2 }
 0x11e   :  { %v152_v53 = vmax.f32 %v149_v51, 0.0 }
 0x11f   :  { %v158_v59 = vmax.f32 %v156_v52, %v157_v56 }
 0x120   :  { %v164_v55 = vsel %vm163_vm9, %v152_v53, -inf }
 0x121   :  { %v165_v57 = vmax.f32 %v162_v54, %v164_v55  ;;  %v159_v62 = vrot.slane %v158_v59, 1 }
 0x123   :  { %v166_v58 = vrot.slane %v165_v57, 4  ;;  %v160_v1 = vmax.f32 %v158_v59, %v159_v62 }
 0x125   :  { %v167_v60 = vmax.f32 %v165_v57, %v166_v58 }
 0x127   :  { %v168_v61 = vrot.slane %v167_v60, 2 }
 0x129   :  { %v169_v63 = vmax.f32 %v167_v60, %v168_v61 }
 0x12b   :  { %v170_v0 = vrot.slane %v169_v63, 1 }
 0x12d   :  { %v171_v2 = vmax.f32 %v169_v63, %v170_v0 }
 0x12f   :  { %v172_v3 = vsel %vm163_vm9, %v160_v1, %v171_v2 }
 0x130   :  { %v178_v4 = vrot.slane %v172_v3, 4  ;;  %v174_v5 = vrot.slane %v172_v3, 6 }
 0x132   :  { %179 = vrot.lane.b32.xlu1 %v178_v4, %s552_s2  ;;  %175 = vrot.lane.b32.xlu0 %v174_v5, %s553_s25 }
 0x1a4   :  { %v180_v10 = vpop.permute.xlu1 %179  ;;  %v176_v11 = vpop.permute.xlu0 %175 }
 0x1a5   :  { %v183_v12 = vsel %vm182_vm10, %v172_v3, %v176_v11 }
 0x1a6   :  { %v184_v13 = vsel %vm153_vm7, %v183_v12, %v180_v10 }
 0x1a7   :  { %v185_v14 = vpack.c.bf16 %v184_v13, %v184_v13  ;;  %v497_v13 = vld [vmem:[#allocation2 + $0x48] sm:$0xff] }
 0x1a8   :  { %417 = vmatpush.bf16.msra.mxu1 %v497_v13 }
 0x1a9   :  { %453 = vmatmul.msk.bf16.vlgmr.msra.gmra.mxu2 %vm77_vm1, %v185_v14  ;;  %v496_v14 = vld [vmem:[#allocation2 + $0x40] sm:$0xff] }
 0x1ac   :  { %418 = vmatpush.bf16.msra.mxu1 %v496_v14 }
 0x1b9   :  { %230 = vmatmul.bf16.vlgmr.msrb.gmra.mxu2 %v554_v15  ;;  %v495_v15 = vld [vmem:[#allocation2 + $0x38] sm:$0xff] }
 0x1ba   :  { %419 = vmatpush.bf16.msra.mxu1 %v495_v15 }
 0x22c   :  { %v202_v16 = vpop.f32.mrf.mxu2 }
 0x22d   :  { %v203_v20 = vadd.f32 %v202_v16, %v186_v18  ;;  %v494_v16 = vld [vmem:[#allocation2 + $0x30] sm:$0xff] }
 0x22e   :  { %420 = vmatpush.bf16.msra.mxu1 %v494_v16 }
 0x234   :  { %v204_v17 = vpop.f32.mrf.mxu2 }
 0x235   :  { %v493_v17 = vld [vmem:[#allocation2 + $0x28] sm:$0xff] }
 0x236   :  { %421 = vmatpush.bf16.msra.mxu1 %v493_v17 }
 0x23c   :  { %v231_v21 = vpop.f32.mrf.mxu2 }
 0x23d   :  { %v235_v22 = vadd.f32 %v231_v21, %v203_v20  ;;  %v492_v21 = vld [vmem:[#allocation2 + $0x20] sm:$0xff] }
 0x23e   :  { %422 = vmatpush.bf16.msra.mxu1 %v492_v21 }
 0x23f   :  { %v237_v23 = vmul.f32 %v610_v19, %v235_v22 }
 0x241   :  { %509 = vtanh.f32 %v237_v23 }
 0x244   :  { %v233_v24 = vpop.f32.mrf.mxu2 }
 0x247   :  { %v510_v26 = vpop.eup %509 }
 0x248   :  { %v239_v27 = vmul.f32 %v510_v26, %v610_v19 }
 0x24a   :  { %v241_v28 = vadd.f32 %v240_v25, %v239_v27 }
 0x24c   :  { %244 = vrot.lane.b32.xlu2 %v241_v28, %s548_s17  ;;  %v242_v31 = vmul.f32 0.0, %v241_v28 }
 0x2a6   :  { %v245_v29 = vpop.permute.xlu2 %244 }
 0x2a7   :  { %v247_v30 = vmul.f32 %v245_v29, %v241_v28 }
 0x2a9   :  { %249 = vrot.lane.b32.xlu0 %v247_v30, %s555_s26 }
 0x31b   :  { %v250_v32 = vpop.permute.xlu0 %249 }
 0x31c   :  { %v252_v33 = vadd.f32 %v250_v32, %v242_v31 }
 0x31e   :  { %511 = vtanh.f32 %v252_v33  ;;  %v288_v50 = vrot.slane %v252_v33, 6 }
 0x324   :  { %v512_v34 = vpop.eup %511 }
 0x325   :  { %255 = vrot.lane.b32.xlu1 %v512_v34, %s548_s17 }
 0x397   :  { %v256_v35 = vpop.permute.xlu1 %255 }
 0x398   :  { %v258_v36 = vmul.f32 %v256_v35, %v241_v28  ;;  %v374_v28 = vperm.slane %v601_v43, 2 }
 0x39a   :  { %v259_v37 = vpack.c.bf16 %v258_v36, %v258_v36 }
 0x39c   :  { %261 = vrot.lane.b32.xlu2 %v259_v37, %s555_s26 }
 0x3f6   :  { %v262_v38 = vpop.permute.xlu2 %261 }
 0x3f7   :  { %462 = vmatmul.msk.bf16.vlgmr.msra.gmra.mxu3 %vm218_vm11, %v262_v38 }
 0x47a   :  { %v275_v39 = vpop.f32.mrf.mxu3 }
 0x47b   :  { %v280_v40 = vrot.slane %v275_v39, 6 }
 0x47d   :  { %v282_v41 = vadd.f32 %v280_v40, %v203_v20 }
 0x47f   :  { %v283_v42 = vmul.f32 %v282_v41, %v610_v19 }
 0x481   :  { %513 = vtanh.f32 %v283_v42 }
 0x482   :  { %v277_v44 = vpop.f32.mrf.mxu3 }
 0x487   :  { %v514_v45 = vpop.eup %513 }
 0x488   :  { %v285_v46 = vmul.f32 %v514_v45, %v610_v19 }
 0x48a   :  { %v286_v47 = vadd.f32 %v285_v46, %v240_v25 }
 0x48c   :  { %292 = vrot.lane.b32.xlu0 %v286_v47, %s548_s17  ;;  %v290_v51 = vmul.f32 %v288_v50, %v286_v47 }
 0x4fe   :  { %v293_v48 = vpop.permute.xlu0 %292 }
 0x4ff   :  { %v295_v49 = vmul.f32 %v293_v48, %v286_v47 }
 0x501   :  { %297 = vrot.lane.b32.xlu1 %v295_v49, %s555_s26 }
 0x573   :  { %v298_v52 = vpop.permute.xlu1 %297 }
 0x574   :  { %v300_v53 = vadd.f32 %v298_v52, %v290_v51 }
 0x576   :  { %515 = vtanh.f32 %v300_v53  ;;  %v337_v7 = vrot.slane %v300_v53, 6 }
 0x57c   :  { %v516_v54 = vpop.eup %515 }
 0x57d   :  { %303 = vrot.lane.b32.xlu2 %v516_v54, %s548_s17 }
 0x5d7   :  { %v304_v55 = vpop.permute.xlu2 %303 }
 0x5d8   :  { %v306_v56 = vmul.f32 %v304_v55, %v286_v47 }
 0x5da   :  { %v307_v57 = vpack.c.bf16 %v306_v56, %v306_v56  ;;  %v361_v6 = vrot.slane %v306_v56, 2 }
 0x5dc   :  { %v309_v58 = vrot.slane %v307_v57, 1 }
 0x5de   :  { %310 = vrot.lane.b32.xlu0 %v309_v58, %s555_s26 }
 0x650   :  { %v311_v59 = vpop.permute.xlu0 %310 }
 0x651   :  { %463 = vmatmul.msk.bf16.vlgmr.msrb.gmra.mxu0 %vm218_vm11, %v311_v59 }
 0x6ce   :  { %v324_v60 = vpop.f32.mrf.mxu0 }
 0x6cf   :  { %v329_v61 = vrot.slane %v324_v60, 4 }
 0x6d1   :  { %v331_v62 = vadd.f32 %v329_v61, %v203_v20 }
 0x6d3   :  { %v332_v63 = vmul.f32 %v331_v62, %v610_v19 }
 0x6d5   :  { %517 = vtanh.f32 %v332_v63 }
 0x6d6   :  { %v326_v0 = vpop.f32.mrf.mxu0 }
 0x6db   :  { %v518_v1 = vpop.eup %517 }
 0x6dc   :  { %v334_v2 = vmul.f32 %v518_v1, %v610_v19 }
 0x6de   :  { %v335_v3 = vadd.f32 %v334_v2, %v240_v25 }
 0x6e0   :  { %341 = vrot.lane.b32.xlu1 %v335_v3, %s548_s17  ;;  %v339_v8 = vmul.f32 %v337_v7, %v335_v3 }
 0x6e8   :  { %357 = vrot.lane.b32.xlu1 %v258_v36, %s555_s26 }
 0x752   :  { %v342_v4 = vpop.permute.xlu1 %341 }
 0x753   :  { %v344_v5 = vmul.f32 %v342_v4, %v335_v3 }
 0x755   :  { %346 = vrot.lane.b32.xlu2 %v344_v5, %s555_s26 }
 0x75a   :  { %v358_v23 = vpop.permute.xlu1 %357 }
 0x75d   :  { %362 = vrot.lane.b32.xlu2 %v361_v6, %s548_s17 }
 0x7af   :  { %v347_v9 = vpop.permute.xlu2 %346 }
 0x7b0   :  { %v349_v10 = vadd.f32 %v347_v9, %v339_v8 }
 0x7b2   :  { %519 = vtanh.f32 %v349_v10  ;;  %v432_v11 = vrot.slane %v349_v10, 4 }
 0x7b4   :  { %433 = vrot.lane.b32.xlu2 %v432_v11, %s549_s18 }
 0x7b7   :  { %v363_v22 = vpop.permute.xlu2 %362 }
 0x7b8   :  { %v520_v12 = vpop.eup %519  ;;  %v370_v24 = vsel %vm218_vm11, %v358_v23, %v363_v22 }
 0x7b9   :  { %352 = vrot.lane.b32.xlu0 %v520_v12, %s548_s17 }
 0x80e   :  { %v434_v32 = vpop.permute.xlu2 %433 }
 0x82b   :  { %v353_v18 = vpop.permute.xlu0 %352 }
 0x82c   :  { %v355_v19 = vmul.f32 %v353_v18, %v335_v3 }
 0x82e   :  { %v366_v20 = vrot.slane %v355_v19, 4 }
 0x830   :  { %428 = vrot.lane.b32.xlu1 %v366_v20, %s556_s27  ;;  %367 = vrot.lane.b32.xlu0 %v366_v20, %s557_s28 }
 0x8a2   :  { %v368_v25 = vpop.permute.xlu0 %367  ;;  %v429_v31 = vpop.permute.xlu1 %428 }
 0x8a3   :  { %v372_v26 = vsel %vm371_vm12, %v370_v24, %v368_v25 }
 0x8a4   :  { %v373_v27 = vpack.c.bf16 %v372_v26, %v372_v26 }
 0x8a6   :  { %488 = vmatmul.msk.bf16.vlgmr.msra.gmra.mxu1 %vm411_vm13, %v373_v27 }
 0x923   :  { %v424_v29 = vpop.f32.mrf.mxu1 }
 0x924   :  { %v425_v30 = vadd.f32 %v424_v29, %v374_v28 }
 0x926   :  { %v436_v33 = vsel %vm73_vm0, %v425_v30, %v429_v31 }
 0x927   :  { %v438_v34 = vsel %vm437_vm14, %v436_v33, %v434_v32 }
 0x928   :  { %v440_v35 = vsel %vm439_vm15, %v438_v34, 0.0 }
 0x929   :  { %441 = vst [vmem:[%s644_s3] sm:$0x3] %v440_v35 }
 0x92b   :  { %v426_v36 = vpop.f32.mrf.mxu1 }
 0x92c   :  { %446 = vsyncpa [#allocation3], 1 }

</bundles_post_ra>
